<compile_context>
chip_gen: v5e
topology: v5e:2x2
jax: 0.10.0
libtpu: 0.0.40
codegen_flags: <defaults>
</compile_context>

<pallas_src>
import math

import jax
import jax.numpy as jnp
from jax.experimental import pallas as pl
from jax.experimental.pallas import tpu as pltpu


def bias_kernel(bias_ref, out_ref):
    """forward(input) -> self.bias : a straight VMEM copy of the parameter."""
    out_ref[...] = bias_ref[...]


def bias_forward(x, bias):
    """Equivalent of Bias.forward(input): returns the (1, dim) bias.

    `x` is accepted only for API parity with the PyTorch module and is ignored
    (exactly like the reference forward), so it is never passed to the kernel.
    """
    del x
    dim = bias.shape[-1]
    nbytes = bias.size * bias.dtype.itemsize
    cost = pl.CostEstimate(flops=0, transcendentals=0, bytes_accessed=2 * nbytes)

    # Typical case (small bias): single whole-array VMEM-resident copy,
    # output aliased to the input parameter.
    VMEM_BUDGET = 8 * 1024 * 1024  # conservative: fits scoped VMEM on v5e/v6e/v7x
    if nbytes <= VMEM_BUDGET or dim % 128 != 0:
        vmem = pl.BlockSpec(memory_space=pltpu.MemorySpace.VMEM)
        return pl.pallas_call(
            bias_kernel,
            out_shape=jax.ShapeDtypeStruct(bias.shape, bias.dtype),
            in_specs=[vmem],
            out_specs=vmem,
            input_output_aliases={0: 0},
            cost_estimate=cost,
        )(bias)

    # Guard rail for very large dim (multiple of 128): lane-dense 1-D grid so
    # the per-step VMEM footprint stays well under the scoped default on every
    # chip generation and BlockSpec double-buffers the DMA near HBM roofline.
    blk = 128 * 1024  # 512 KiB per f32 block; halve until it divides dim
    while dim % blk != 0:
        blk //= 2
    spec = pl.BlockSpec((1, blk), lambda i: (0, i))
    return pl.pallas_call(
        bias_kernel,
        out_shape=jax.ShapeDtypeStruct(bias.shape, bias.dtype),
        grid=(dim // blk,),
        in_specs=[spec],
        out_specs=spec,
        input_output_aliases={0: 0},
        cost_estimate=cost,
        compiler_params=pltpu.CompilerParams(dimension_semantics=("parallel",)),
    )(bias)


def make_bias_param(key, dim, trainable=True):
    """PyTorch-style init: trainable -> U(-1/sqrt(dim), 1/sqrt(dim)); else zeros."""
    if not trainable:
        return jnp.zeros((1, dim), jnp.float32)
    bound = 1.0 / math.sqrt(dim)
    return jax.random.uniform(key, (1, dim), jnp.float32, -bound, bound)


if __name__ == "__main__":
    key = jax.random.PRNGKey(0)
    kb, kx = jax.random.split(key)

    dim = 128      # lane-dense last dim (one full vreg lane width)
    batch = 2

    bias = make_bias_param(kb, dim, trainable=True)          # (1, 128) parameter
    x = jax.random.normal(kx, (batch, dim), jnp.float32)     # ignored by forward

    out = bias_forward(x, bias)
    out = jax.block_until_ready(out)

    # Correctness: forward must return the bias parameter itself, shape (1, dim).
    assert out.shape == (1, dim), f"bad output shape {out.shape}"
    assert out.dtype == bias.dtype, f"bad output dtype {out.dtype}"
    assert jnp.array_equal(out, bias), "Bias forward mismatch"

    # Also check the non-trainable (zeros buffer) variant.
    zbias = make_bias_param(kb, dim, trainable=False)
    zout = jax.block_until_ready(bias_forward(x, zbias))
    assert jnp.array_equal(zout, jnp.zeros((1, dim), jnp.float32)), "zero-bias mismatch"

    print("KERNEL_OK")
</pallas_src>

<mosaic_0001>
module attributes {stable_mosaic.version = 11 : i64} {
  func.func @bias_kernel(%arg0: memref<1x128xf32, #tpu.memory_space<vmem>>, %arg1: memref<1x128xf32, #tpu.memory_space<vmem>>) attributes {dimension_semantics = [], scalar_prefetch = 0 : i64, scratch_operands = 0 : i64, tpu.core_type = #tpu.core_type<tc>} {
    %c0 = arith.constant 0 : index
    %c0_0 = arith.constant 0 : index
    %0 = vector.load %arg0[%c0, %c0_0] : memref<1x128xf32, #tpu.memory_space<vmem>>, vector<1x128xf32>
    %c0_1 = arith.constant 0 : index
    %c0_2 = arith.constant 0 : index
    %1 = vector.load %arg1[%c0_1, %c0_2] : memref<1x128xf32, #tpu.memory_space<vmem>>, vector<1x128xf32>
    tpu.vector_store %arg1[%c0_1, %c0_2], %0 {strides = array<i32>} : memref<1x128xf32, #tpu.memory_space<vmem>>, vector<1x128xf32>,
    return
  }
}

</mosaic_0001>

<bundles_post_ra>
// kernel: tpu_custom_call.1
= control target key start
LH: loop header
LB: loop body
LE: loop exit
PB: predicated region body
PF: predicated region fallthrough
CT: control target
= control target key end

     0   :  { %6 = vsyncpa [#allocation3], 0  ;;  %s114_s0 = inlined_call_operand.hbm [shape: f32[1,128], index: 0, kind: input, shape index: {}, may-alias: {0,1}]   ;;  %s115_s1 = inlined_call_operand.hbm [shape: f32[1,128], index: 1, kind: output, shape index: {}, may-alias: {0,1}]  }
   0x1   :  { %7 = vsyncpa [#allocation4], 0  ;;  %s13_s8 = sshll.u32 %s114_s0, 4  ;;  %s96_s9 = smov [#allocation2]   ;;  %s14_s8 = int_to_ptr.hbm [resolvable:$true] %s13_s8 }
   0x2   :  { %s15_s10 = sshll.u32 %s96_s9, 4  ;;  %s16_s10 = int_to_ptr.vmem [resolvable:$true] %s15_s10 }
   0x3   :  { %18 = dma.hbm_to_vmem [thread:$0]  %s14_s8, 16, %s16_s10, [#allocation3]  }
   0x4   :  { %92 = dma.done.wait [#allocation3], 16  }
   0x5   :  { %93 = vsyncadd [#allocation3], 4294967280  ;;  %s97_s11 = smov [#allocation5]   ;;  %s32_s15 = sshll.u32 %s115_s1, 4  ;;  %v23_v0 = vld [vmem:[#allocation2] sm:$0x1]  ;;  %s33_s15 = int_to_ptr.hbm [resolvable:$true] %s32_s15 }
   0x6   :  { %s30_s12 = sshll.u32 %s97_s11, 4  ;;  %24 = vst [vmem:[#allocation5] sm:$0x1] %v23_v0  ;;  %s31_s12 = int_to_ptr.vmem [resolvable:$true] %s30_s12 }
   0x7   :  { %35 = dma.vmem_to_hbm [thread:$0]  %s31_s12, 16, %s33_s15, [#allocation4]  }
   0x8   :  { %94 = dma.done.wait [#allocation4], 16  }
   0x9   :  { %95 = vsyncadd [#allocation4], 4294967280 }
   0xa   :  { %40 = vsyncpa [#allocation3], 1 }
   0xb   :  { %41 = vsyncpa [#allocation4], 1 }

</bundles_post_ra>
